<compile_context>
chip_gen: v6e
topology: v6e:2x2x1
jax: 0.10.0
libtpu: 0.0.40
codegen_flags: <defaults>
</compile_context>

<pallas_src>
import jax
import jax.numpy as jnp
from jax import lax
from jax.experimental import pallas as pl
from jax.experimental.pallas import tpu as pltpu

EPS = 1e-5          # torch.nn.LayerNorm default
NEG_INF = -1e10     # unavailable-action mask value
STATS_W = 128       # lane-dense packed (action, logp) output width

# Rows of the packed small-parameter slab (each row padded to PROW lanes, f32).
ROW_GF, ROW_BF = 0, 1
ROW_B1, ROW_G1, ROW_BE1 = 2, 3, 4
ROW_B2, ROW_G2, ROW_BE2 = 5, 6, 7
ROW_BR_GATE, ROW_BZ_GATE, ROW_BIN, ROW_BHN = 8, 9, 10, 11
ROW_GR, ROW_BR_LN = 12, 13
ROW_BA = 14
N_ROWS = 16  # padded to a multiple of 8 sublanes


def _round_up(x, m):
    return (x + m - 1) // m * m


def _ln(v, g, b):
    mu = jnp.mean(v, axis=-1, keepdims=True)
    var = jnp.mean((v - mu) ** 2, axis=-1, keepdims=True)
    return (v - mu) * lax.rsqrt(var + EPS) * g + b


def _mm(a, w):
    # bf16 MXU operands (w is stored bf16), f32 accumulation.
    return jnp.dot(a.astype(jnp.bfloat16), w, preferred_element_type=jnp.float32)


def _mm16(a16, w):
    # operand already bf16.
    return jnp.dot(a16, w, preferred_element_type=jnp.float32)


# --------------------------------------------------------------------------
# Kernel
# --------------------------------------------------------------------------
def r_actor_kernel(obs_ref, h_ref, mask_ref, avail_ref,
                   pvec_ref, w1_ref, w2_ref, wrz_ref, wni_ref, wnh_ref, wa_ref,
                   stats_ref, hout_ref):
    D = obs_ref.shape[-1]
    H = h_ref.shape[-1]

    pv = pvec_ref[...]                       # (N_ROWS, PROW) f32, VMEM-resident

    def row(r, n):                           # (1, n), static lane-0-aligned slice
        return pv[r:r + 1, :n]

    # ---- MLPBase: feature_norm -> [Linear + ReLU + LayerNorm] x 2 ---------
    x = obs_ref[...]
    x = _ln(x, row(ROW_GF, D), row(ROW_BF, D))

    x = jnp.maximum(_mm(x, w1_ref[...]) + row(ROW_B1, H), 0.0)
    x = _ln(x, row(ROW_G1, H), row(ROW_BE1, H))

    x = jnp.maximum(_mm(x, w2_ref[...]) + row(ROW_B2, H), 0.0)
    x = _ln(x, row(ROW_G2, H), row(ROW_BE2, H))

    # ---- RNNLayer: masked single-step GRU (recurrent_N = 1) + LayerNorm ---
    h = h_ref[...] * mask_ref[...]
    # Cast once, reuse for all GRU matmuls; K-fused r/z gates keep every gate
    # result lane-0 aligned while halving the number of r/z matmul issues.
    x16 = x.astype(jnp.bfloat16)
    h16 = h.astype(jnp.bfloat16)
    xh16 = jnp.concatenate([x16, h16], axis=-1)          # (TB, 2H)

    r = jax.nn.sigmoid(_mm16(xh16, wrz_ref[0]) + row(ROW_BR_GATE, H))
    z = jax.nn.sigmoid(_mm16(xh16, wrz_ref[1]) + row(ROW_BZ_GATE, H))
    gi_n = _mm16(x16, wni_ref[...])
    gh_n = _mm16(h16, wnh_ref[...])
    n = jnp.tanh(gi_n + row(ROW_BIN, H) + r * (gh_n + row(ROW_BHN, H)))
    h_new = (1.0 - z) * n + z * h
    hout_ref[...] = h_new

    x = _ln(h_new, row(ROW_GR, H), row(ROW_BR_LN, H))

    # ---- ACTLayer (Discrete, deterministic) -------------------------------
    A_PAD = avail_ref.shape[-1]
    logits = _mm(x, wa_ref[...]) + row(ROW_BA, A_PAD)
    logits = jnp.where(avail_ref[...] > 0.0, logits, NEG_INF)

    mx = jnp.max(logits, axis=-1, keepdims=True)
    colf = lax.broadcasted_iota(jnp.int32, logits.shape, 1).astype(jnp.float32)
    idx_f = jnp.min(jnp.where(logits == mx, colf, float(A_PAD)),
                    axis=-1, keepdims=True)                 # first argmax index

    lse = jnp.log(jnp.sum(jnp.exp(logits - mx), axis=-1, keepdims=True)) + mx
    logp_sel = jnp.sum(jnp.where(colf == idx_f, logits - lse, 0.0),
                       axis=-1, keepdims=True)

    # Lane-dense packed output: lane 0 = action index (as float), lane 1 = logp.
    scolf = lax.broadcasted_iota(jnp.int32, stats_ref.shape, 1).astype(jnp.float32)
    stats_ref[...] = (jnp.where(scolf == 0.0, idx_f, 0.0)
                      + jnp.where(scolf == 1.0, logp_sel, 0.0))


# --------------------------------------------------------------------------
# Wrapper
# --------------------------------------------------------------------------
def r_actor_forward(obs, rnn_states, masks, available_actions, params,
                    block_b=512):
    """params: output of prepare_params(raw). Returns (actions, log_probs, rnn_states)."""
    B, D = obs.shape
    H = params["w1"].shape[1]
    A_PAD = params["wa"].shape[1]
    PROW = params["pvec"].shape[1]
    A = available_actions.shape[1]

    TB = min(block_b, _round_up(B, 8))       # batch tile (sublane-aligned)
    Bp = _round_up(B, TB)
    pad = Bp - B

    h_in = rnn_states.reshape(B, H)
    avail_p = jnp.zeros((Bp, A_PAD), jnp.float32).at[:B, :A].set(available_actions)
    if pad:
        avail_p = avail_p.at[B:, :A].set(1.0)   # keep padded rows non-degenerate
        obs = jnp.pad(obs, ((0, pad), (0, 0)))
        h_in = jnp.pad(h_in, ((0, pad), (0, 0)))
        masks = jnp.pad(masks, ((0, pad), (0, 0)))

    grid = (Bp // TB,)

    def tile2(shape):
        return pl.BlockSpec(shape, lambda i: (i, 0))

    def keep2(shape):
        return pl.BlockSpec(shape, lambda i: (0, 0))

    def keep3(shape):
        return pl.BlockSpec(shape, lambda i: (0, 0, 0))

    in_specs = [
        tile2((TB, D)),             # obs            (per-step)
        tile2((TB, H)),             # rnn state      (per-step)
        tile2((TB, 1)),             # masks          (per-step)
        tile2((TB, A_PAD)),         # avail actions  (per-step)
        keep2((N_ROWS, PROW)),      # packed small params (resident)
        keep2((D, H)),              # fc1 weight (bf16, resident)
        keep2((H, H)),              # fc2 weight (bf16, resident)
        keep3((2, 2 * H, H)),       # K-fused r/z gate weights (bf16, resident)
        keep2((H, H)),              # n-gate input weight  (bf16, resident)
        keep2((H, H)),              # n-gate hidden weight (bf16, resident)
        keep2((H, A_PAD)),          # action head    (bf16, resident)
    ]
    out_specs = (tile2((TB, STATS_W)), tile2((TB, H)))
    out_shape = (jax.ShapeDtypeStruct((Bp, STATS_W), jnp.float32),
                 jax.ShapeDtypeStruct((Bp, H), jnp.float32))

    flops = 2 * Bp * (D * H + H * H + 6 * H * H + H * A_PAD)
    transcendentals = Bp * (3 * H + A_PAD + 8)
    bytes_accessed = (4 * Bp * (D + H + 1 + A_PAD + STATS_W + H)
                      + 2 * (D * H + H * H + 6 * H * H + H * A_PAD)
                      + 4 * N_ROWS * PROW)

    stats, h_out = pl.pallas_call(
        r_actor_kernel,
        grid=grid,
        in_specs=in_specs,
        out_specs=out_specs,
        out_shape=out_shape,
        compiler_params=pltpu.CompilerParams(
            dimension_semantics=("parallel",)),
        cost_estimate=pl.CostEstimate(flops=flops,
                                      transcendentals=transcendentals,
                                      bytes_accessed=bytes_accessed),
    )(obs, h_in, masks, avail_p,
      params["pvec"], params["w1"], params["w2"],
      params["wrz"], params["wni"], params["wnh"], params["wa"])

    actions = stats[:B, 0:1].astype(jnp.int32)
    log_probs = stats[:B, 1:2]
    new_rnn_states = h_out[:B].reshape(B, 1, H)
    return actions, log_probs, new_rnn_states


# --------------------------------------------------------------------------
# Parameter construction / packing
# --------------------------------------------------------------------------
def make_raw_params(key, obs_dim, hidden, action_dim):
    ks = jax.random.split(key, 8)
    scale = 0.1
    return {
        # feature_norm LayerNorm
        "gf": jnp.ones((1, obs_dim), jnp.float32),
        "bf": jnp.zeros((1, obs_dim), jnp.float32),
        # fc1
        "w1_t": scale * jax.random.normal(ks[0], (obs_dim, hidden), jnp.float32),
        "b1": jnp.zeros((1, hidden), jnp.float32),
        "g1": jnp.ones((1, hidden), jnp.float32),
        "be1": jnp.zeros((1, hidden), jnp.float32),
        # fc2 (layer_N = 1)
        "w2_t": scale * jax.random.normal(ks[1], (hidden, hidden), jnp.float32),
        "b2": jnp.zeros((1, hidden), jnp.float32),
        "g2": jnp.ones((1, hidden), jnp.float32),
        "be2": jnp.zeros((1, hidden), jnp.float32),
        # GRU (recurrent_N = 1), torch gate order (r, z, n); W_t layout (in, out)
        "wih_t": scale * jax.random.normal(ks[2], (hidden, 3 * hidden), jnp.float32),
        "whh_t": scale * jax.random.normal(ks[3], (hidden, 3 * hidden), jnp.float32),
        "bih": scale * jax.random.normal(ks[4], (1, 3 * hidden), jnp.float32),
        "bhh": scale * jax.random.normal(ks[5], (1, 3 * hidden), jnp.float32),
        # RNNLayer LayerNorm
        "gr": jnp.ones((1, hidden), jnp.float32),
        "br": jnp.zeros((1, hidden), jnp.float32),
        # ACTLayer (Discrete)
        "wa_t": scale * jax.random.normal(ks[6], (hidden, action_dim), jnp.float32),
        "ba": scale * jax.random.normal(ks[7], (1, action_dim), jnp.float32),
    }


def prepare_params(raw):
    """Pack raw parameters into the kernel layout (one bias slab, K-fused r/z gate
    weights, per-gate bf16 n-gate weights, 128-lane-padded action head)."""
    D, H = raw["w1_t"].shape
    A = raw["wa_t"].shape[1]
    A_PAD = _round_up(A, 128)
    PROW = _round_up(max(D, H, A_PAD), 128)

    def prow(v):
        v = jnp.asarray(v, jnp.float32).reshape(-1)
        return jnp.pad(v, (0, PROW - v.shape[0]))

    bih = raw["bih"].reshape(-1)
    bhh = raw["bhh"].reshape(-1)
    rows = [
        prow(raw["gf"]), prow(raw["bf"]),
        prow(raw["b1"]), prow(raw["g1"]), prow(raw["be1"]),
        prow(raw["b2"]), prow(raw["g2"]), prow(raw["be2"]),
        prow(bih[0:H] + bhh[0:H]),            # r-gate bias (pre-summed)
        prow(bih[H:2 * H] + bhh[H:2 * H]),    # z-gate bias (pre-summed)
        prow(bih[2 * H:3 * H]),               # n-gate input bias
        prow(bhh[2 * H:3 * H]),               # n-gate hidden bias
        prow(raw["gr"]), prow(raw["br"]),
        prow(raw["ba"]),
    ]
    while len(rows) < N_ROWS:
        rows.append(jnp.zeros((PROW,), jnp.float32))
    pvec = jnp.stack(rows)                    # (N_ROWS, PROW) f32

    wih_t, whh_t = raw["wih_t"], raw["whh_t"]            # (H, 3H), gate order (r,z,n)
    wih_r, wih_z, wih_n = wih_t[:, 0:H], wih_t[:, H:2 * H], wih_t[:, 2 * H:3 * H]
    whh_r, whh_z, whh_n = whh_t[:, 0:H], whh_t[:, H:2 * H], whh_t[:, 2 * H:3 * H]
    # K-fused r/z gate weights: [x, h] (B, 2H) @ wrz[g] (2H, H).
    wrz = jnp.stack([jnp.concatenate([wih_r, whh_r], axis=0),
                     jnp.concatenate([wih_z, whh_z], axis=0)]).astype(jnp.bfloat16)
    wa = (jnp.zeros((H, A_PAD), jnp.float32)
          .at[:, :A].set(raw["wa_t"]).astype(jnp.bfloat16))

    return {
        "pvec": pvec,
        "w1": raw["w1_t"].astype(jnp.bfloat16),
        "w2": raw["w2_t"].astype(jnp.bfloat16),
        "wrz": wrz,                              # (2, 2H, H) bf16
        "wni": wih_n.astype(jnp.bfloat16),       # (H, H) bf16
        "wnh": whh_n.astype(jnp.bfloat16),       # (H, H) bf16
        "wa": wa,
    }


# --------------------------------------------------------------------------
# Pure-JAX reference (same bf16-operand / f32-accumulate matmul precision)
# --------------------------------------------------------------------------
def r_actor_reference(obs, rnn_states, masks, available_actions, raw):
    def mm(a, w):
        return jnp.dot(a.astype(jnp.bfloat16), w.astype(jnp.bfloat16),
                       preferred_element_type=jnp.float32)

    x = _ln(obs, raw["gf"], raw["bf"])
    x = jnp.maximum(mm(x, raw["w1_t"]) + raw["b1"], 0.0)
    x = _ln(x, raw["g1"], raw["be1"])
    x = jnp.maximum(mm(x, raw["w2_t"]) + raw["b2"], 0.0)
    x = _ln(x, raw["g2"], raw["be2"])

    B = obs.shape[0]
    H = raw["w1_t"].shape[1]
    h = rnn_states.reshape(B, H) * masks
    gi = mm(x, raw["wih_t"]) + raw["bih"]
    gh = mm(h, raw["whh_t"]) + raw["bhh"]
    r = jax.nn.sigmoid(gi[:, :H] + gh[:, :H])
    z = jax.nn.sigmoid(gi[:, H:2 * H] + gh[:, H:2 * H])
    n = jnp.tanh(gi[:, 2 * H:] + r * gh[:, 2 * H:])
    h_new = (1.0 - z) * n + z * h
    x = _ln(h_new, raw["gr"], raw["br"])

    logits = mm(x, raw["wa_t"]) + raw["ba"]
    logits = jnp.where(available_actions > 0.0, logits, NEG_INF)
    acts = jnp.argmax(logits, axis=-1, keepdims=True).astype(jnp.int32)
    logp_all = jax.nn.log_softmax(logits, axis=-1)
    logp = jnp.take_along_axis(logp_all, acts, axis=-1)
    return acts, logp, h_new.reshape(B, 1, H), logits


# TODO(synk): only the deterministic (argmax) discrete-action path and the
# MLPBase obs encoder are implemented; stochastic Categorical sampling and the
# CNN/attention encoders of the original module are not covered by this kernel.

if __name__ == "__main__":
    B, OBS_DIM, HIDDEN, ACTION_DIM = 21, 24, 64, 5   # B not a multiple of 8 -> exercises padding

    key = jax.random.PRNGKey(0)
    k_obs, k_h, k_par = jax.random.split(key, 3)

    obs = jax.random.normal(k_obs, (B, OBS_DIM), jnp.float32)
    rnn_states = jax.random.normal(k_h, (B, 1, HIDDEN), jnp.float32)  # recurrent_N = 1
    masks = (jnp.arange(B) % 2).astype(jnp.float32).reshape(B, 1)
    available_actions = jnp.ones((B, ACTION_DIM), jnp.float32).at[::2, 0].set(0.0)

    raw = make_raw_params(k_par, OBS_DIM, HIDDEN, ACTION_DIM)
    params = prepare_params(raw)

    # block_b=8 at this toy size so the batch grid actually takes multiple steps.
    acts, logp, h_out = r_actor_forward(obs, rnn_states, masks,
                                        available_actions, params, block_b=8)
    jax.block_until_ready((acts, logp, h_out))

    acts_r, logp_r, h_r, logits_r = r_actor_reference(
        obs, rnn_states, masks, available_actions, raw)

    # Robust checks (bf16 MXU operands make exact tie-breaks seed-sensitive):
    # 1) the kernel's action must achieve the reference max logit (within tol);
    top_r = jnp.max(logits_r, axis=-1, keepdims=True)
    picked_r = jnp.take_along_axis(logits_r, acts, axis=-1)
    assert bool(jnp.all(picked_r >= top_r - 1e-2)), "action not argmax"
    # 2) where the reference top-2 margin is clear, actions must match exactly;
    second_r = jnp.sort(logits_r, axis=-1)[:, -2:-1]
    clear = (top_r - second_r) > 5e-2
    assert bool(jnp.all(jnp.where(clear, acts == acts_r, True))), "action mismatch"
    # 3) log-prob at the kernel's action and the new hidden state must agree.
    logp_at_acts = jnp.take_along_axis(jax.nn.log_softmax(logits_r, axis=-1), acts, axis=-1)
    assert jnp.allclose(logp, logp_at_acts, rtol=1e-2, atol=1e-2), "log_prob mismatch"
    assert jnp.allclose(h_out, h_r, rtol=1e-2, atol=1e-2), "rnn_state mismatch"

    print("KERNEL_OK")
</pallas_src>

<mosaic_0001>
module attributes {stable_mosaic.version = 11 : i64} {
  func.func @r_actor_kernel(%arg0: i32, %arg1: memref<8x24xf32, #tpu.memory_space<vmem>>, %arg2: memref<8x64xf32, #tpu.memory_space<vmem>>, %arg3: memref<8x1xf32, #tpu.memory_space<vmem>>, %arg4: memref<8x128xf32, #tpu.memory_space<vmem>>, %arg5: memref<16x128xf32, #tpu.memory_space<vmem>>, %arg6: memref<24x64xbf16, #tpu.memory_space<vmem>>, %arg7: memref<64x64xbf16, #tpu.memory_space<vmem>>, %arg8: memref<2x128x64xbf16, #tpu.memory_space<vmem>>, %arg9: memref<64x64xbf16, #tpu.memory_space<vmem>>, %arg10: memref<64x64xbf16, #tpu.memory_space<vmem>>, %arg11: memref<64x128xbf16, #tpu.memory_space<vmem>>, %arg12: memref<8x128xf32, #tpu.memory_space<vmem>>, %arg13: memref<8x64xf32, #tpu.memory_space<vmem>>) attributes {dimension_semantics = [#tpu.dimension_semantics<parallel>], iteration_bounds = array<i64: 3>, scalar_prefetch = 0 : i64, scratch_operands = 0 : i64, tpu.core_type = #tpu.core_type<tc>, window_params = [{transform_indices = @transform_0, window_bounds = array<i64: 8, 24>}, {transform_indices = @transform_1, window_bounds = array<i64: 8, 64>}, {transform_indices = @transform_2, window_bounds = array<i64: 8, 1>}, {transform_indices = @transform_3, window_bounds = array<i64: 8, 128>}, {pipeline_mode = #tpu.pipeline_mode<synchronous>, transform_indices = @transform_4, window_bounds = array<i64: 16, 128>}, {pipeline_mode = #tpu.pipeline_mode<synchronous>, transform_indices = @transform_5, window_bounds = array<i64: 24, 64>}, {pipeline_mode = #tpu.pipeline_mode<synchronous>, transform_indices = @transform_6, window_bounds = array<i64: 64, 64>}, {pipeline_mode = #tpu.pipeline_mode<synchronous>, transform_indices = @transform_7, window_bounds = array<i64: 2, 128, 64>}, {pipeline_mode = #tpu.pipeline_mode<synchronous>, transform_indices = @transform_8, window_bounds = array<i64: 64, 64>}, {pipeline_mode = #tpu.pipeline_mode<synchronous>, transform_indices = @transform_9, window_bounds = array<i64: 64, 64>}, {pipeline_mode = #tpu.pipeline_mode<synchronous>, transform_indices = @transform_10, window_bounds = array<i64: 64, 128>}, {transform_indices = @transform_11, window_bounds = array<i64: 8, 128>}, {transform_indices = @transform_12, window_bounds = array<i64: 8, 64>}]} {
    %c0 = arith.constant 0 : index
    %c0_0 = arith.constant 0 : index
    %0 = vector.load %arg5[%c0, %c0_0] : memref<16x128xf32, #tpu.memory_space<vmem>>, vector<16x128xf32>
    %c0_1 = arith.constant 0 : index
    %c0_2 = arith.constant 0 : index
    %1 = vector.load %arg1[%c0_1, %c0_2] : memref<8x24xf32, #tpu.memory_space<vmem>>, vector<8x24xf32>
    %2 = vector.extract_strided_slice %0 {offsets = [0, 0], sizes = [1, 24], strides = [1, 1]} : vector<16x128xf32> to vector<1x24xf32>
    %3 = vector.extract_strided_slice %0 {offsets = [1, 0], sizes = [1, 24], strides = [1, 1]} : vector<16x128xf32> to vector<1x24xf32>
    %cst = arith.constant dense<0.000000e+00> : vector<8xf32>
    %4 = vector.multi_reduction <add>, %1, %cst [1] : vector<8x24xf32> to vector<8xf32>
    %5 = vector.shape_cast %4 : vector<8xf32> to vector<8x1xf32>
    %cst_3 = arith.constant 2.400000e+01 : f32
    %6 = vector.broadcast %cst_3 : f32 to vector<8x1xf32>
    %7 = arith.divf %5, %6 : vector<8x1xf32>
    %8 = vector.broadcast %7 : vector<8x1xf32> to vector<8x24xf32>
    %9 = arith.subf %1, %8 : vector<8x24xf32>
    %10 = arith.mulf %9, %9 : vector<8x24xf32>
    %cst_4 = arith.constant dense<0.000000e+00> : vector<8xf32>
    %11 = vector.multi_reduction <add>, %10, %cst_4 [1] : vector<8x24xf32> to vector<8xf32>
    %12 = vector.shape_cast %11 : vector<8xf32> to vector<8x1xf32>
    %cst_5 = arith.constant 2.400000e+01 : f32
    %13 = vector.broadcast %cst_5 : f32 to vector<8x1xf32>
    %14 = arith.divf %12, %13 : vector<8x1xf32>
    %15 = vector.broadcast %7 : vector<8x1xf32> to vector<8x24xf32>
    %16 = arith.subf %1, %15 : vector<8x24xf32>
    %cst_6 = arith.constant 9.99999974E-6 : f32
    %17 = vector.broadcast %cst_6 : f32 to vector<8x1xf32>
    %18 = arith.addf %14, %17 : vector<8x1xf32>
    %19 = math.rsqrt %18 : vector<8x1xf32>
    %20 = vector.broadcast %19 : vector<8x1xf32> to vector<8x24xf32>
    %21 = arith.mulf %16, %20 : vector<8x24xf32>
    %22 = vector.broadcast %2 : vector<1x24xf32> to vector<8x24xf32>
    %23 = arith.mulf %21, %22 : vector<8x24xf32>
    %24 = vector.broadcast %3 : vector<1x24xf32> to vector<8x24xf32>
    %25 = arith.addf %23, %24 : vector<8x24xf32>
    %c0_7 = arith.constant 0 : index
    %c0_8 = arith.constant 0 : index
    %26 = vector.load %arg6[%c0_7, %c0_8] : memref<24x64xbf16, #tpu.memory_space<vmem>>, vector<24x64xbf16>
    %27 = arith.truncf %25 : vector<8x24xf32> to vector<8x24xbf16>
    %cst_9 = arith.constant dense<0.000000e+00> : vector<8x64xf32>
    %28 = tpu.matmul %27, %26, %cst_9 {dimension_numbers = #tpu.dot_dimension_numbers<[1], [0], [0], [1], [0, 0, 1, 1], [], []>} : vector<8x24xbf16>, vector<24x64xbf16>, vector<8x64xf32> -> vector<8x64xf32>
    %29 = vector.extract_strided_slice %0 {offsets = [2, 0], sizes = [1, 64], strides = [1, 1]} : vector<16x128xf32> to vector<1x64xf32>
    %30 = vector.broadcast %29 : vector<1x64xf32> to vector<8x64xf32>
    %31 = arith.addf %28, %30 : vector<8x64xf32>
    %cst_10 = arith.constant 0.000000e+00 : f32
    %32 = vector.broadcast %cst_10 : f32 to vector<8x64xf32>
    %33 = arith.maximumf %31, %32 : vector<8x64xf32>
    %34 = vector.extract_strided_slice %0 {offsets = [3, 0], sizes = [1, 64], strides = [1, 1]} : vector<16x128xf32> to vector<1x64xf32>
    %35 = vector.extract_strided_slice %0 {offsets = [4, 0], sizes = [1, 64], strides = [1, 1]} : vector<16x128xf32> to vector<1x64xf32>
    %cst_11 = arith.constant dense<0.000000e+00> : vector<8xf32>
    %36 = vector.multi_reduction <add>, %33, %cst_11 [1] : vector<8x64xf32> to vector<8xf32>
    %37 = vector.shape_cast %36 : vector<8xf32> to vector<8x1xf32>
    %cst_12 = arith.constant 6.400000e+01 : f32
    %38 = vector.broadcast %cst_12 : f32 to vector<8x1xf32>
    %39 = arith.divf %37, %38 : vector<8x1xf32>
    %40 = vector.broadcast %39 : vector<8x1xf32> to vector<8x64xf32>
    %41 = arith.subf %33, %40 : vector<8x64xf32>
    %42 = arith.mulf %41, %41 : vector<8x64xf32>
    %cst_13 = arith.constant dense<0.000000e+00> : vector<8xf32>
    %43 = vector.multi_reduction <add>, %42, %cst_13 [1] : vector<8x64xf32> to vector<8xf32>
    %44 = vector.shape_cast %43 : vector<8xf32> to vector<8x1xf32>
    %cst_14 = arith.constant 6.400000e+01 : f32
    %45 = vector.broadcast %cst_14 : f32 to vector<8x1xf32>
    %46 = arith.divf %44, %45 : vector<8x1xf32>
    %47 = vector.broadcast %39 : vector<8x1xf32> to vector<8x64xf32>
    %48 = arith.subf %33, %47 : vector<8x64xf32>
    %cst_15 = arith.constant 9.99999974E-6 : f32
    %49 = vector.broadcast %cst_15 : f32 to vector<8x1xf32>
    %50 = arith.addf %46, %49 : vector<8x1xf32>
    %51 = math.rsqrt %50 : vector<8x1xf32>
    %52 = vector.broadcast %51 : vector<8x1xf32> to vector<8x64xf32>
    %53 = arith.mulf %48, %52 : vector<8x64xf32>
    %54 = vector.broadcast %34 : vector<1x64xf32> to vector<8x64xf32>
    %55 = arith.mulf %53, %54 : vector<8x64xf32>
    %56 = vector.broadcast %35 : vector<1x64xf32> to vector<8x64xf32>
    %57 = arith.addf %55, %56 : vector<8x64xf32>
    %c0_16 = arith.constant 0 : index
    %c0_17 = arith.constant 0 : index
    %58 = vector.load %arg7[%c0_16, %c0_17] : memref<64x64xbf16, #tpu.memory_space<vmem>>, vector<64x64xbf16>
    %59 = arith.truncf %57 : vector<8x64xf32> to vector<8x64xbf16>
    %cst_18 = arith.constant dense<0.000000e+00> : vector<8x64xf32>
    %60 = tpu.matmul %59, %58, %cst_18 {dimension_numbers = #tpu.dot_dimension_numbers<[1], [0], [0], [1], [0, 0, 1, 1], [], []>} : vector<8x64xbf16>, vector<64x64xbf16>, vector<8x64xf32> -> vector<8x64xf32>
    %61 = vector.extract_strided_slice %0 {offsets = [5, 0], sizes = [1, 64], strides = [1, 1]} : vector<16x128xf32> to vector<1x64xf32>
    %62 = vector.broadcast %61 : vector<1x64xf32> to vector<8x64xf32>
    %63 = arith.addf %60, %62 : vector<8x64xf32>
    %cst_19 = arith.constant 0.000000e+00 : f32
    %64 = vector.broadcast %cst_19 : f32 to vector<8x64xf32>
    %65 = arith.maximumf %63, %64 : vector<8x64xf32>
    %66 = vector.extract_strided_slice %0 {offsets = [6, 0], sizes = [1, 64], strides = [1, 1]} : vector<16x128xf32> to vector<1x64xf32>
    %67 = vector.extract_strided_slice %0 {offsets = [7, 0], sizes = [1, 64], strides = [1, 1]} : vector<16x128xf32> to vector<1x64xf32>
    %cst_20 = arith.constant dense<0.000000e+00> : vector<8xf32>
    %68 = vector.multi_reduction <add>, %65, %cst_20 [1] : vector<8x64xf32> to vector<8xf32>
    %69 = vector.shape_cast %68 : vector<8xf32> to vector<8x1xf32>
    %cst_21 = arith.constant 6.400000e+01 : f32
    %70 = vector.broadcast %cst_21 : f32 to vector<8x1xf32>
    %71 = arith.divf %69, %70 : vector<8x1xf32>
    %72 = vector.broadcast %71 : vector<8x1xf32> to vector<8x64xf32>
    %73 = arith.subf %65, %72 : vector<8x64xf32>
    %74 = arith.mulf %73, %73 : vector<8x64xf32>
    %cst_22 = arith.constant dense<0.000000e+00> : vector<8xf32>
    %75 = vector.multi_reduction <add>, %74, %cst_22 [1] : vector<8x64xf32> to vector<8xf32>
    %76 = vector.shape_cast %75 : vector<8xf32> to vector<8x1xf32>
    %cst_23 = arith.constant 6.400000e+01 : f32
    %77 = vector.broadcast %cst_23 : f32 to vector<8x1xf32>
    %78 = arith.divf %76, %77 : vector<8x1xf32>
    %79 = vector.broadcast %71 : vector<8x1xf32> to vector<8x64xf32>
    %80 = arith.subf %65, %79 : vector<8x64xf32>
    %cst_24 = arith.constant 9.99999974E-6 : f32
    %81 = vector.broadcast %cst_24 : f32 to vector<8x1xf32>
    %82 = arith.addf %78, %81 : vector<8x1xf32>
    %83 = math.rsqrt %82 : vector<8x1xf32>
    %84 = vector.broadcast %83 : vector<8x1xf32> to vector<8x64xf32>
    %85 = arith.mulf %80, %84 : vector<8x64xf32>
    %86 = vector.broadcast %66 : vector<1x64xf32> to vector<8x64xf32>
    %87 = arith.mulf %85, %86 : vector<8x64xf32>
    %88 = vector.broadcast %67 : vector<1x64xf32> to vector<8x64xf32>
    %89 = arith.addf %87, %88 : vector<8x64xf32>
    %c0_25 = arith.constant 0 : index
    %c0_26 = arith.constant 0 : index
    %90 = vector.load %arg2[%c0_25, %c0_26] : memref<8x64xf32, #tpu.memory_space<vmem>>, vector<8x64xf32>
    %c0_27 = arith.constant 0 : index
    %c0_28 = arith.constant 0 : index
    %91 = vector.load %arg3[%c0_27, %c0_28] : memref<8x1xf32, #tpu.memory_space<vmem>>, vector<8x1xf32>
    %92 = vector.broadcast %91 : vector<8x1xf32> to vector<8x64xf32>
    %93 = arith.mulf %90, %92 : vector<8x64xf32>
    %94 = arith.truncf %89 : vector<8x64xf32> to vector<8x64xbf16>
    %95 = arith.truncf %93 : vector<8x64xf32> to vector<8x64xbf16>
    %96 = tpu.concatenate %94, %95 in 1 : vector<8x64xbf16>, vector<8x64xbf16> -> vector<8x128xbf16>
    %c0_29 = arith.constant 0 : index
    %c0_30 = arith.constant 0 : index
    %c0_31 = arith.constant 0 : index
    %97 = vector.load %arg8[%c0_29, %c0_30, %c0_31] : memref<2x128x64xbf16, #tpu.memory_space<vmem>>, vector<1x128x64xbf16>
    %98 = vector.shape_cast %97 : vector<1x128x64xbf16> to vector<128x64xbf16>
    %cst_32 = arith.constant dense<0.000000e+00> : vector<8x64xf32>
    %99 = tpu.matmul %96, %98, %cst_32 {dimension_numbers = #tpu.dot_dimension_numbers<[1], [0], [0], [1], [0, 0, 1, 1], [], []>} : vector<8x128xbf16>, vector<128x64xbf16>, vector<8x64xf32> -> vector<8x64xf32>
    %100 = vector.extract_strided_slice %0 {offsets = [8, 0], sizes = [1, 64], strides = [1, 1]} : vector<16x128xf32> to vector<1x64xf32>
    %101 = vector.broadcast %100 : vector<1x64xf32> to vector<8x64xf32>
    %102 = arith.addf %99, %101 : vector<8x64xf32>
    %103 = arith.negf %102 : vector<8x64xf32>
    %104 = math.exp %103 : vector<8x64xf32>
    %cst_33 = arith.constant 1.000000e+00 : f32
    %105 = vector.broadcast %cst_33 : f32 to vector<8x64xf32>
    %106 = arith.addf %105, %104 : vector<8x64xf32>
    %107 = arith.divf %105, %106 : vector<8x64xf32>
    %c1 = arith.constant 1 : index
    %c0_34 = arith.constant 0 : index
    %c0_35 = arith.constant 0 : index
    %108 = vector.load %arg8[%c1, %c0_34, %c0_35] : memref<2x128x64xbf16, #tpu.memory_space<vmem>>, vector<1x128x64xbf16>
    %109 = vector.shape_cast %108 : vector<1x128x64xbf16> to vector<128x64xbf16>
    %cst_36 = arith.constant dense<0.000000e+00> : vector<8x64xf32>
    %110 = tpu.matmul %96, %109, %cst_36 {dimension_numbers = #tpu.dot_dimension_numbers<[1], [0], [0], [1], [0, 0, 1, 1], [], []>} : vector<8x128xbf16>, vector<128x64xbf16>, vector<8x64xf32> -> vector<8x64xf32>
    %111 = vector.extract_strided_slice %0 {offsets = [9, 0], sizes = [1, 64], strides = [1, 1]} : vector<16x128xf32> to vector<1x64xf32>
    %112 = vector.broadcast %111 : vector<1x64xf32> to vector<8x64xf32>
    %113 = arith.addf %110, %112 : vector<8x64xf32>
    %114 = arith.negf %113 : vector<8x64xf32>
    %115 = math.exp %114 : vector<8x64xf32>
    %cst_37 = arith.constant 1.000000e+00 : f32
    %116 = vector.broadcast %cst_37 : f32 to vector<8x64xf32>
    %117 = arith.addf %116, %115 : vector<8x64xf32>
    %118 = arith.divf %116, %117 : vector<8x64xf32>
    %c0_38 = arith.constant 0 : index
    %c0_39 = arith.constant 0 : index
    %119 = vector.load %arg9[%c0_38, %c0_39] : memref<64x64xbf16, #tpu.memory_space<vmem>>, vector<64x64xbf16>
    %cst_40 = arith.constant dense<0.000000e+00> : vector<8x64xf32>
    %120 = tpu.matmul %94, %119, %cst_40 {dimension_numbers = #tpu.dot_dimension_numbers<[1], [0], [0], [1], [0, 0, 1, 1], [], []>} : vector<8x64xbf16>, vector<64x64xbf16>, vector<8x64xf32> -> vector<8x64xf32>
    %c0_41 = arith.constant 0 : index
    %c0_42 = arith.constant 0 : index
    %121 = vector.load %arg10[%c0_41, %c0_42] : memref<64x64xbf16, #tpu.memory_space<vmem>>, vector<64x64xbf16>
    %cst_43 = arith.constant dense<0.000000e+00> : vector<8x64xf32>
    %122 = tpu.matmul %95, %121, %cst_43 {dimension_numbers = #tpu.dot_dimension_numbers<[1], [0], [0], [1], [0, 0, 1, 1], [], []>} : vector<8x64xbf16>, vector<64x64xbf16>, vector<8x64xf32> -> vector<8x64xf32>
    %123 = vector.extract_strided_slice %0 {offsets = [10, 0], sizes = [1, 64], strides = [1, 1]} : vector<16x128xf32> to vector<1x64xf32>
    %124 = vector.broadcast %123 : vector<1x64xf32> to vector<8x64xf32>
    %125 = arith.addf %120, %124 : vector<8x64xf32>
    %126 = vector.extract_strided_slice %0 {offsets = [11, 0], sizes = [1, 64], strides = [1, 1]} : vector<16x128xf32> to vector<1x64xf32>
    %127 = vector.broadcast %126 : vector<1x64xf32> to vector<8x64xf32>
    %128 = arith.addf %122, %127 : vector<8x64xf32>
    %129 = arith.mulf %107, %128 : vector<8x64xf32>
    %130 = arith.addf %125, %129 : vector<8x64xf32>
    %131 = math.tanh %130 : vector<8x64xf32>
    %cst_44 = arith.constant 1.000000e+00 : f32
    %132 = vector.broadcast %cst_44 : f32 to vector<8x64xf32>
    %133 = arith.subf %132, %118 : vector<8x64xf32>
    %134 = arith.mulf %133, %131 : vector<8x64xf32>
    %135 = arith.mulf %118, %93 : vector<8x64xf32>
    %136 = arith.addf %134, %135 : vector<8x64xf32>
    %c0_45 = arith.constant 0 : index
    %c0_46 = arith.constant 0 : index
    %137 = vector.load %arg13[%c0_45, %c0_46] : memref<8x64xf32, #tpu.memory_space<vmem>>, vector<8x64xf32>
    tpu.vector_store %arg13[%c0_45, %c0_46], %136 {strides = array<i32>} : memref<8x64xf32, #tpu.memory_space<vmem>>, vector<8x64xf32>,
    %138 = vector.extract_strided_slice %0 {offsets = [12, 0], sizes = [1, 64], strides = [1, 1]} : vector<16x128xf32> to vector<1x64xf32>
    %139 = vector.extract_strided_slice %0 {offsets = [13, 0], sizes = [1, 64], strides = [1, 1]} : vector<16x128xf32> to vector<1x64xf32>
    %cst_47 = arith.constant dense<0.000000e+00> : vector<8xf32>
    %140 = vector.multi_reduction <add>, %136, %cst_47 [1] : vector<8x64xf32> to vector<8xf32>
    %141 = vector.shape_cast %140 : vector<8xf32> to vector<8x1xf32>
    %cst_48 = arith.constant 6.400000e+01 : f32
    %142 = vector.broadcast %cst_48 : f32 to vector<8x1xf32>
    %143 = arith.divf %141, %142 : vector<8x1xf32>
    %144 = vector.broadcast %143 : vector<8x1xf32> to vector<8x64xf32>
    %145 = arith.subf %136, %144 : vector<8x64xf32>
    %146 = arith.mulf %145, %145 : vector<8x64xf32>
    %cst_49 = arith.constant dense<0.000000e+00> : vector<8xf32>
    %147 = vector.multi_reduction <add>, %146, %cst_49 [1] : vector<8x64xf32> to vector<8xf32>
    %148 = vector.shape_cast %147 : vector<8xf32> to vector<8x1xf32>
    %cst_50 = arith.constant 6.400000e+01 : f32
    %149 = vector.broadcast %cst_50 : f32 to vector<8x1xf32>
    %150 = arith.divf %148, %149 : vector<8x1xf32>
    %151 = vector.broadcast %143 : vector<8x1xf32> to vector<8x64xf32>
    %152 = arith.subf %136, %151 : vector<8x64xf32>
    %cst_51 = arith.constant 9.99999974E-6 : f32
    %153 = vector.broadcast %cst_51 : f32 to vector<8x1xf32>
    %154 = arith.addf %150, %153 : vector<8x1xf32>
    %155 = math.rsqrt %154 : vector<8x1xf32>
    %156 = vector.broadcast %155 : vector<8x1xf32> to vector<8x64xf32>
    %157 = arith.mulf %152, %156 : vector<8x64xf32>
    %158 = vector.broadcast %138 : vector<1x64xf32> to vector<8x64xf32>
    %159 = arith.mulf %157, %158 : vector<8x64xf32>
    %160 = vector.broadcast %139 : vector<1x64xf32> to vector<8x64xf32>
    %161 = arith.addf %159, %160 : vector<8x64xf32>
    %c0_52 = arith.constant 0 : index
    %c0_53 = arith.constant 0 : index
    %162 = vector.load %arg11[%c0_52, %c0_53] : memref<64x128xbf16, #tpu.memory_space<vmem>>, vector<64x128xbf16>
    %163 = arith.truncf %161 : vector<8x64xf32> to vector<8x64xbf16>
    %cst_54 = arith.constant dense<0.000000e+00> : vector<8x128xf32>
    %164 = tpu.matmul %163, %162, %cst_54 {dimension_numbers = #tpu.dot_dimension_numbers<[1], [0], [0], [1], [0, 0, 1, 1], [], []>} : vector<8x64xbf16>, vector<64x128xbf16>, vector<8x128xf32> -> vector<8x128xf32>
    %165 = vector.extract_strided_slice %0 {offsets = [14, 0], sizes = [1, 128], strides = [1, 1]} : vector<16x128xf32> to vector<1x128xf32>
    %166 = vector.broadcast %165 : vector<1x128xf32> to vector<8x128xf32>
    %167 = arith.addf %164, %166 : vector<8x128xf32>
    %c0_55 = arith.constant 0 : index
    %c0_56 = arith.constant 0 : index
    %168 = vector.load %arg4[%c0_55, %c0_56] : memref<8x128xf32, #tpu.memory_space<vmem>>, vector<8x128xf32>
    %cst_57 = arith.constant 0.000000e+00 : f32
    %169 = vector.broadcast %cst_57 : f32 to vector<8x128xf32>
    %170 = arith.cmpf ogt, %168, %169 : vector<8x128xf32>
    %cst_58 = arith.constant -1.000000e+10 : f32
    %171 = vector.broadcast %cst_58 : f32 to vector<8x128xf32>
    %172 = arith.select %170, %167, %171 : vector<8x128xi1>, vector<8x128xf32>
    %cst_59 = arith.constant dense<0xFF800000> : vector<8xf32>
    %173 = vector.multi_reduction <maximumf>, %172, %cst_59 [1] : vector<8x128xf32> to vector<8xf32>
    %174 = vector.shape_cast %173 : vector<8xf32> to vector<8x1xf32>
    %175 = tpu.iota {dimensions = array<i32: 1>} : vector<8x128xi32>
    %176 = arith.sitofp %175 : vector<8x128xi32> to vector<8x128xf32>
    %177 = vector.broadcast %174 : vector<8x1xf32> to vector<8x128xf32>
    %178 = arith.cmpf oeq, %172, %177 : vector<8x128xf32>
    %cst_60 = arith.constant 1.280000e+02 : f32
    %179 = vector.broadcast %cst_60 : f32 to vector<8x128xf32>
    %180 = arith.select %178, %176, %179 : vector<8x128xi1>, vector<8x128xf32>
    %cst_61 = arith.constant dense<0x7F800000> : vector<8xf32>
    %181 = vector.multi_reduction <minimumf>, %180, %cst_61 [1] : vector<8x128xf32> to vector<8xf32>
    %182 = vector.shape_cast %181 : vector<8xf32> to vector<8x1xf32>
    %183 = vector.broadcast %174 : vector<8x1xf32> to vector<8x128xf32>
    %184 = arith.subf %172, %183 : vector<8x128xf32>
    %185 = math.exp %184 : vector<8x128xf32>
    %cst_62 = arith.constant dense<0.000000e+00> : vector<8xf32>
    %186 = vector.multi_reduction <add>, %185, %cst_62 [1] : vector<8x128xf32> to vector<8xf32>
    %187 = vector.shape_cast %186 : vector<8xf32> to vector<8x1xf32>
    %188 = math.log %187 : vector<8x1xf32>
    %189 = arith.addf %188, %174 : vector<8x1xf32>
    %190 = vector.broadcast %182 : vector<8x1xf32> to vector<8x128xf32>
    %191 = arith.cmpf oeq, %176, %190 : vector<8x128xf32>
    %192 = vector.broadcast %189 : vector<8x1xf32> to vector<8x128xf32>
    %193 = arith.subf %172, %192 : vector<8x128xf32>
    %cst_63 = arith.constant 0.000000e+00 : f32
    %194 = vector.broadcast %cst_63 : f32 to vector<8x128xf32>
    %195 = arith.select %191, %193, %194 : vector<8x128xi1>, vector<8x128xf32>
    %cst_64 = arith.constant dense<0.000000e+00> : vector<8xf32>
    %196 = vector.multi_reduction <add>, %195, %cst_64 [1] : vector<8x128xf32> to vector<8xf32>
    %197 = vector.shape_cast %196 : vector<8xf32> to vector<8x1xf32>
    %198 = tpu.iota {dimensions = array<i32: 1>} : vector<8x128xi32>
    %199 = arith.sitofp %198 : vector<8x128xi32> to vector<8x128xf32>
    %cst_65 = arith.constant 0.000000e+00 : f32
    %200 = vector.broadcast %cst_65 : f32 to vector<8x128xf32>
    %201 = arith.cmpf oeq, %199, %200 : vector<8x128xf32>
    %cst_66 = arith.constant 0.000000e+00 : f32
    %202 = vector.shape_cast %182 : vector<8x1xf32> to vector<8x1xf32>
    %203 = vector.broadcast %202 : vector<8x1xf32> to vector<8x128xf32>
    %204 = vector.broadcast %cst_66 : f32 to vector<8x128xf32>
    %205 = arith.select %201, %203, %204 : vector<8x128xi1>, vector<8x128xf32>
    %cst_67 = arith.constant 1.000000e+00 : f32
    %206 = vector.broadcast %cst_67 : f32 to vector<8x128xf32>
    %207 = arith.cmpf oeq, %199, %206 : vector<8x128xf32>
    %cst_68 = arith.constant 0.000000e+00 : f32
    %208 = vector.shape_cast %197 : vector<8x1xf32> to vector<8x1xf32>
    %209 = vector.broadcast %208 : vector<8x1xf32> to vector<8x128xf32>
    %210 = vector.broadcast %cst_68 : f32 to vector<8x128xf32>
    %211 = arith.select %207, %209, %210 : vector<8x128xi1>, vector<8x128xf32>
    %212 = arith.addf %205, %211 : vector<8x128xf32>
    %c0_69 = arith.constant 0 : index
    %c0_70 = arith.constant 0 : index
    %213 = vector.load %arg12[%c0_69, %c0_70] : memref<8x128xf32, #tpu.memory_space<vmem>>, vector<8x128xf32>
    tpu.vector_store %arg12[%c0_69, %c0_70], %212 {strides = array<i32>} : memref<8x128xf32, #tpu.memory_space<vmem>>, vector<8x128xf32>,
    return
  }
  func.func @transform_0(%arg0: i32) -> (i32, i32) {
    %c0_i32 = arith.constant 0 : i32
    %c0_i32_0 = arith.constant 0 : i32
    return %arg0, %c0_i32 : i32, i32
  }
  func.func @transform_1(%arg0: i32) -> (i32, i32) {
    %c0_i32 = arith.constant 0 : i32
    %c0_i32_0 = arith.constant 0 : i32
    return %arg0, %c0_i32 : i32, i32
  }
  func.func @transform_2(%arg0: i32) -> (i32, i32) {
    %c0_i32 = arith.constant 0 : i32
    %c0_i32_0 = arith.constant 0 : i32
    return %arg0, %c0_i32 : i32, i32
  }
  func.func @transform_3(%arg0: i32) -> (i32, i32) {
    %c0_i32 = arith.constant 0 : i32
    %c0_i32_0 = arith.constant 0 : i32
    return %arg0, %c0_i32 : i32, i32
  }
  func.func @transform_4(%arg0: i32) -> (i32, i32) {
    %c0_i32 = arith.constant 0 : i32
    %c0_i32_0 = arith.constant 0 : i32
    %c0_i32_1 = arith.constant 0 : i32
    return %c0_i32, %c0_i32_0 : i32, i32
  }
  func.func @transform_5(%arg0: i32) -> (i32, i32) {
    %c0_i32 = arith.constant 0 : i32
    %c0_i32_0 = arith.constant 0 : i32
    %c0_i32_1 = arith.constant 0 : i32
    return %c0_i32, %c0_i32_0 : i32, i32
  }
  func.func @transform_6(%arg0: i32) -> (i32, i32) {
    %c0_i32 = arith.constant 0 : i32
    %c0_i32_0 = arith.constant 0 : i32
    %c0_i32_1 = arith.constant 0 : i32
    return %c0_i32, %c0_i32_0 : i32, i32
  }
  func.func @transform_7(%arg0: i32) -> (i32, i32, i32) {
    %c0_i32 = arith.constant 0 : i32
    %c0_i32_0 = arith.constant 0 : i32
    %c0_i32_1 = arith.constant 0 : i32
    %c0_i32_2 = arith.constant 0 : i32
    return %c0_i32, %c0_i32_0, %c0_i32_1 : i32, i32, i32
  }
  func.func @transform_8(%arg0: i32) -> (i32, i32) {
    %c0_i32 = arith.constant 0 : i32
    %c0_i32_0 = arith.constant 0 : i32
    %c0_i32_1 = arith.constant 0 : i32
    return %c0_i32, %c0_i32_0 : i32, i32
  }
  func.func @transform_9(%arg0: i32) -> (i32, i32) {
    %c0_i32 = arith.constant 0 : i32
    %c0_i32_0 = arith.constant 0 : i32
    %c0_i32_1 = arith.constant 0 : i32
    return %c0_i32, %c0_i32_0 : i32, i32
  }
  func.func @transform_10(%arg0: i32) -> (i32, i32) {
    %c0_i32 = arith.constant 0 : i32
    %c0_i32_0 = arith.constant 0 : i32
    %c0_i32_1 = arith.constant 0 : i32
    return %c0_i32, %c0_i32_0 : i32, i32
  }
  func.func @transform_11(%arg0: i32) -> (i32, i32) {
    %c0_i32 = arith.constant 0 : i32
    %c0_i32_0 = arith.constant 0 : i32
    return %arg0, %c0_i32 : i32, i32
  }
  func.func @transform_12(%arg0: i32) -> (i32, i32) {
    %c0_i32 = arith.constant 0 : i32
    %c0_i32_0 = arith.constant 0 : i32
    return %arg0, %c0_i32 : i32, i32
  }
}

</mosaic_0001>

<bundles_post_ra>
// kernel: tpu_custom_call.1
= control target key start
LH: loop header
LB: loop body
LE: loop exit
PB: predicated region body
PF: predicated region fallthrough
CT: control target
= control target key end

     0   :  { %s2337_s0 = inlined_call_operand.vmem [shape: f32[24,24], index: 0, kind: input, shape index: {}]   ;;  %s2338_s1 = inlined_call_operand.vmem [shape: f32[24,64], index: 1, kind: input, shape index: {}]   ;;  %s2339_s2 = inlined_call_operand.vmem [shape: f32[24,1], index: 2, kind: input, shape index: {}]   ;;  %s2340_s3 = inlined_call_operand.vmem [shape: f32[24,128], index: 3, kind: input, shape index: {}]   ;;  %s2341_s4 = inlined_call_operand.vmem [shape: f32[16,128], index: 4, kind: input, shape index: {}]   ;;  %s2342_s5 = inlined_call_operand.hbm [shape: bf16[24,64], index: 5, kind: input, shape index: {}]   ;;  %s2343_s6 = inlined_call_operand.vmem [shape: bf16[64,64], index: 6, kind: input, shape index: {}]   ;;  %s2344_s7 = inlined_call_operand.vmem [shape: bf16[2,128,64], index: 7, kind: input, shape index: {}]   ;;  %s2345_s8 = inlined_call_operand.vmem [shape: bf16[64,64], index: 8, kind: input, shape index: {}]   ;;  %s2346_s9 = inlined_call_operand.vmem [shape: bf16[64,64], index: 9, kind: input, shape index: {}]   ;;  %s2347_s10 = inlined_call_operand.vmem [shape: bf16[64,128], index: 10, kind: input, shape index: {}]   ;;  %s2348_s11 = inlined_call_operand.hbm [shape: f32[24,128], index: 11, kind: output, shape index: {0}]   ;;  %s2349_s12 = inlined_call_operand.hbm [shape: f32[24,64], index: 12, kind: output, shape index: {1}]  }
   0x1   :  { %2352 = sst [smem:[#allocation12_spill]] %s2337_s0 }
   0x2   :  { %2353 = sst [smem:[#allocation13_spill]] %s2338_s1 }
   0x3   :  { %2354 = sst [smem:[#allocation14_spill]] %s2339_s2 }
   0x4   :  { %2355 = sst [smem:[#allocation15_spill]] %s2340_s3 }
   0x5   :  { %18 = vsyncpa [#allocation3], 0 }
   0x6   :  { %19 = vsyncpa [#allocation4], 0 }
   0x7   :  { %21 = vsyncpa [#allocation4 + $0x1], 0 }
   0x8   :  { %22 = vsyncpa [#allocation7], 0 }
   0x9   :  { %24 = vsyncpa [#allocation7 + $0x1], 0  ;;  %s1952_s21 = smov 0   ;;  %s1954_s22 = smov 0  }
   0xa   :  { %s1956_s23 = smov 0   ;;  %s1958_s24 = smov 0  }
   0xb LB: > { %s1973_s25 = sadd.s32 4294967295, %s1876_s24   ;;  %s1425_s26 = sadd.s32 4294967294, %s1876_s24   ;;  %s1876_s24 = sphi %s1958_s24, %s2371_s24   ;;  %s1872_s23 = sphi %s1956_s23, %s2370_s23   ;;  %s1868_s22 = sphi %s1954_s22, %s2369_s22   ;;  %s1864_s21 = sphi %s1952_s21, %s2368_s21  }
   0xc   : > { %s1977_s27 = sadd.s32 1, %s1876_s24   ;;  %s288_s28 = sadd.s32 1, %s1872_s23 }
   0xd   : > { %s285_s29 = ssub.s32 %s1876_s24, %s1977_s27  ;;  %p298_p0 = scmp.ne.s32.totalorder %s1872_s23, %s1868_s22 }
   0xe   : > { %p286_p1 = scmp.eq.s32.totalorder %s285_s29, 0  ;;  %p299_p2 = scmp.eq.s32.totalorder %s1973_s25, 2 }
   0xf   : > { %p304_p3 = scmp.ne.s32.totalorder %s1868_s22, %s1864_s21  ;;  %p305_p4 = scmp.eq.s32.totalorder %s1425_s26, 2 }
  0x10   : > { %s1988_s30 = scalar_select %p286_p1, %s1872_s23, %s288_s28  }
  0x11   : > { %p1990_p5 = por %p299_p2, %p298_p0  ;;  %p1994_p6 = por %p305_p4, %p304_p3 }
  0x12   : > { %2356 = sst [smem:[#allocation11_spill]] %s1988_s30  ;;  %p1426_p7 = scmp.ge.s32.totalorder %s1876_s24, 1 }
  0x13   : > { %s2358_s14 = scalar_select %p1994_p6, 1, 0 }
  0x14   : > { %p338_p8 = scmp.lt.s32.totalorder %s1876_s24, 4  ;;  %p1656_p9 = scmp.eq.s32.totalorder %s1973_s25, 0 }
  0x15   : > { %s1878_s16 = smov [#allocation2]  }
  0x16   : > { %p2001_p10 = pnand %p1426_p7, %p338_p8  ;;  %s353_s17 = sshll.u32 %s1878_s16, 4  ;;  %s354_s17 = int_to_ptr.vmem [resolvable:$true] %s353_s17 }
  0x17   : > { %s1767_s18 = scalar_lea.vmem %s354_s17, 192  ;;  %p1775_p3 = scmp.lt.s32.totalorder %s354_s17, %s354_s17 }
  0x18   : > { %p1645_p11 = pneg %p2001_p10  ;;  %p1768_p0 = scmp.ne.s32.totalorder %s354_s17, %s1767_s18 }
  0x19   : > { %p1776_p4 = scmp.lt.s32.totalorder %s1767_s18, %s1767_s18 }
  0x1a   : > { %p1646_p12 = pnand %p1656_p9, %p1645_p11 }
  0x1b   : > { %p1777_p6 = por %p1776_p4, %p1775_p3 }
  0x1c   : > { %p1758_p13 = pneg %p1646_p12 }
  0x1e   : > { %p1770_p1 = pnand %p1768_p0, %p1758_p13 }
  0x20   : > { %p1771_p2 = pneg %p1770_p1 }
  0x22   : > { %p1778_p7 = pnand %p1777_p6, %p1771_p2 }
  0x24   : > { %1781 = shalt.err (!%p1778_p7)
}
  0x25   : > { %s1879_s19 = smov 64   ;;  %s1880_s20 = smov 4  }
  0x26   : > { %1648 = dma.hbm_to_vmem [thread:$0]  (!%p1646_p12), %s2342_s5, 192, %s354_s17, [#allocation3], %s1879_s19, %s1879_s19, %s1880_s20  }
  0x27   : > { %412 = sbr.rel (%p2001_p10) target bundleno = 2602 (0xa2a), region = 64 }
  0x2c   : > { %1851 = dma.done.wait (%p1656_p9), [#allocation3], 192  }
  0x2d   : > { %1853 = vsyncadd (%p1656_p9), [#allocation3], 4294967104  ;;  %p470_p8 = scmp.lt.s32.totalorder %s1973_s25, 2  ;;  %s2360_s0 = sld [smem:[#allocation12_spill]]  ;;  %vm490_vm0 = vcmask 195584   ;;  %vm535_vm1 = vcmask 1043456   ;;  %v505_v14 = vlaneseq }
  0x2e   : > { %v1700_v7 = vld [vmem:[#allocation2 + $0x8] ss:$0 sps:$4 sm:$0xff]   ;;  %v1881_v8 = vmov 0.0   ;;  %vm1882_vm2 = vmmov 0   ;;  %v1701_v10 = vld [vmem:[#allocation2] sm:$0xff]   ;;  %vm580_vm3 = vcmask 523264  }
  0x2f   : > { %s471_s29 = scalar_select %p470_p8, %s1973_s25, 2  ;;  %1541 = vmatprep.subr.bf16.mxu0 %v1881_v8  ;;  %1545 = vmatprep.mubr.msk.bf16.mxu0 %vm1882_vm2, %v1881_v8  ;;  %v537_v9 = vsel %vm535_vm1, %v1700_v7, 0  ;;  %v2037_v15 = vshrl.u32 %v505_v14, 7  ;;  %v2043_v17 = vld [vmem:[%s2341_s4] sm:$0xff]  ;;  %v1702_v40 = vld [vmem:[%s2343_s6 + $0x18] sm:$0xff]   ;;  %v1703_v41 = vld [vmem:[%s2343_s6 + $0x10] sm:$0xff]  }
  0x30   : > { %1549 = vmatprep.subr.bf16.mxu1 %v1881_v8  ;;  %1557 = vmatprep.mubr.msk.bf16.mxu1 %vm1882_vm2, %v1881_v8  ;;  %v1704_v42 = vld [vmem:[%s2343_s6 + $0x8] sm:$0xff]   ;;  %v1705_v43 = vld [vmem:[%s2343_s6] sm:$0xff]   ;;  %s2361_s2 = sld [smem:[#allocation14_spill]]  ;;  %v1883_v56 = vmov 0   ;;  %s1884_s26 = smov 64  }
  0x31   : > { %s2020_s16 = sshll.u32 %s471_s29, 3  ;;  %1542 = vmatpush3.bf16.msra.mxu0 %v537_v9  ;;  %v507_v16 = vsub.s32 0, %v2037_v15  ;;  %v512_v18 = vsub.s32 1, %v2037_v15  ;;  %v521_v26 = vsub.s32 2, %v2037_v15  ;;  %1550 = vmatpush3.bf16.msra.mxu1 %v1702_v40  ;;  %v597_v47 = vsub.s32 3, %v2037_v15  ;;  %s2362_s1 = sld [smem:[#allocation13_spill]] }
  0x32   : > { %1543 = vmatprep.subr.bf16.mxu0 %v1881_v8  ;;  %1551 = vmatprep.subr.bf16.mxu1 %v1881_v8  ;;  %v602_v48 = vsub.s32 4, %v2037_v15  ;;  %v616_v58 = vsub.s32 5, %v2037_v15  ;;  %s2363_s3 = sld [smem:[#allocation15_spill]] }
  0x33   : > { %s473_s17 = scalar_lea.vmem %s2360_s0, %s2020_s16  ;;  %v508_v19 = vrot.slane %v2043_v17, %v507_v16  ;;  %v513_v22 = vrot.slane %v2043_v17, %v512_v18  ;;  %v522_v27 = vrot.slane %v2043_v17, %v521_v26  ;;  %v598_v49 = vrot.slane %v2043_v17, %v597_v47  ;;  %1698 = vset.pattern.permute.xlu1 %v1883_v56 }
  0x34   : > { %v489_v0 = vld [vmem:[%s473_s17] sm:$0xff]  ;;  %v603_v52 = vrot.slane %v2043_v17, %v602_v48  ;;  %1699 = vset.pattern.permute.xlu0 %v1883_v56  ;;  %v617_v59 = vrot.slane %v2043_v17, %v616_v58 }
  0x35   : > { %v491_v1 = vsel %vm490_vm0, %v489_v0, 0.0  ;;  %1544 = vmatpush3.bf16.msra.mxu0 %v1701_v10  ;;  %1552 = vmatpush3.bf16.msra.mxu1 %v1703_v41  ;;  %v1728_v56 = vld [vmem:[%s2345_s8] sm:$0xff]  }
  0x36   : > { %492 = vadd.xlane.f32.xlu0 %v491_v1  ;;  %1561 = vmatprep.subr.bf16.mxu0 %v1881_v8  ;;  %s481_s20 = scalar_lea.vmem %s2361_s2, %s2020_s16 }
  0x37   : > { %1553 = vmatprep.subr.bf16.mxu1 %v1881_v8  ;;  %v710_v57 = vld [vmem:[%s481_s20] sm:$0xff]  ;;  %s477_s28 = scalar_lea.vmem %s2362_s1, %s2020_s16 }
  0x38   : > { %s485_s18 = scalar_lea.vmem %s2363_s3, %s2020_s16  ;;  %s2351_s16 = sshll.u32 %s1973_s25, 7 }
  0x39   : > { %1554 = vmatpush3.bf16.msra.mxu1 %v1704_v42  ;;  %s1284_s15 = scalar_lea.hbm %s2349_s12, %s2351_s16 }
  0x3a   : > { %1555 = vmatprep.subr.bf16.mxu1 %v1881_v8 }
  0x3d   : > { %1556 = vmatpush3.bf16.msra.mxu1 %v1705_v43 }
  0x3e   : > { %1581 = vmatprep.subr.bf16.mxu1 %v1881_v8 }
  0xbf   : > { %v493_v2 = vpop.xlane.xlu0 %492 }
  0xc0   : > { %v495_v3 = vmul.f32 0.041666668, %v493_v2 }
  0xc2   : > { %v496_v4 = vsub.f32 %v489_v0, %v495_v3  ;;  %v1706_v3 = vld [vmem:[%s2344_s7 + $0x38] sm:$0xff]  }
  0xc4   : > { %v497_v5 = vmul.f32 %v496_v4, %v496_v4 }
  0xc6   : > { %v498_v6 = vsel %vm490_vm0, %v497_v5, 0.0  ;;  %v1708_v5 = vld [vmem:[%s2344_s7 + $0x30] sm:$0xff]  }
  0xc7   : > { %499 = vadd.xlane.f32.xlu0 %v498_v6  ;;  %v1709_v6 = vld [vmem:[%s2344_s7 + $0x70] sm:$0xff]  }
 0x150   : > { %v500_v11 = vpop.xlane.xlu0 %499 }
 0x151   : > { %v501_v12 = vmul.f32 0.041666668, %v500_v11 }
 0x153   : > { %v502_v13 = vadd.f32 1e-05, %v501_v12 }
 0x155   : > { %1734 = vrsqrt.f32 %v502_v13  ;;  %v709_v13 = vld [vmem:[%s477_s28] sm:$0xff] }
 0x162   : > { %v1735_v20 = vpop.eup %1734 }
 0x163   : > { %v504_v21 = vmul.f32 %v1735_v20, %v496_v4  ;;  %v1707_v4 = vld [vmem:[%s2344_s7 + $0x78] sm:$0xff]   ;;  %v1710_v20 = vld [vmem:[%s2344_s7 + $0x28] sm:$0xff]  }
 0x165   : > { %v509_v23 = vmul.f32 %v508_v19, %v504_v21  ;;  %v1711_v21 = vld [vmem:[%s2344_s7 + $0x68] sm:$0xff]  }
 0x167   : > { %v514_v24 = vadd.f32 %v513_v22, %v509_v23  ;;  %v1712_v23 = vld [vmem:[%s2344_s7 + $0x20] sm:$0xff]  }
 0x169   : > { %v518_v25 = vpack.c.bf16 %v514_v24, %v514_v24  ;;  %v1713_v24 = vld [vmem:[%s2344_s7 + $0x60] sm:$0xff]  }
 0x16b   : > { %1546 = vmatmul.mubr.msk.bf16.vlgmr.msra.gmra.mxu0 %vm490_vm0, %v518_v25  ;;  %v1714_v25 = vld [vmem:[%s2344_s7 + $0x18] sm:$0xff]  }
 0x16c   : > { %1577 = vmatprep.mubr.msk.bf16.mxu0 %vm1882_vm2, %v1881_v8  ;;  %1562 = vmatpush3.bf16.msra.mxu0 %v1706_v3 }
 0x16d   : > { %1563 = vmatprep.subr.bf16.mxu0 %v1881_v8 }
 0x170   : > { %1564 = vmatpush3.bf16.msra.mxu0 %v1708_v5 }
 0x171   : > { %1565 = vmatprep.subr.bf16.mxu0 %v1881_v8 }
 0x174   : > { %1566 = vmatpush3.bf16.msra.mxu0 %v1710_v20 }
 0x175   : > { %1567 = vmatprep.subr.bf16.mxu0 %v1881_v8 }
 0x178   : > { %1568 = vmatpush3.bf16.msra.mxu0 %v1712_v23 }
 0x179   : > { %1569 = vmatprep.subr.bf16.mxu0 %v1881_v8 }
 0x17c   : > { %1570 = vmatpush3.bf16.msra.mxu0 %v1714_v25 }
 0x17d   : > { %1571 = vmatprep.subr.bf16.mxu0 %v1881_v8 }
 0x22b   : > { %v573_v28 = vpop.f32.mrf.mxu0 }
 0x22c   : > { %v574_v29 = vadd.f32 %v573_v28, %v522_v27  ;;  %v1715_v27 = vld [vmem:[%s2344_s7 + $0x58] sm:$0xff]  }
 0x22d   : > { %v1547_v30 = vpop.f32.mrf.mxu0 }
 0x22e   : > { %v579_v31 = vmax.f32 %v574_v29, 0.0  ;;  %v1716_v29 = vld [vmem:[%s2344_s7 + $0x10] sm:$0xff]  }
 0x22f   : > { %v576_v32 = vpop.f32.mrf.mxu0  ;;  %v1717_v30 = vld [vmem:[%s2344_s7 + $0x50] sm:$0xff]   ;;  %1572 = vmatpush3.bf16.msra.mxu0 %v1716_v29 }
 0x230   : > { %v581_v33 = vsel %vm580_vm3, %v579_v31, 0.0  ;;  %v1719_v32 = vld [vmem:[%s2344_s7 + $0x48] sm:$0xff]   ;;  %1573 = vmatprep.subr.bf16.mxu0 %v1881_v8 }
 0x231   : > { %582 = vadd.xlane.f32.xlu1 %v581_v33  ;;  %v1548_v34 = vpop.f32.mrf.mxu0  ;;  %v1720_v33 = vld [vmem:[%s2344_s7] sm:$0xff]  }
 0x232   : > { %v1721_v34 = vld [vmem:[%s2344_s7 + $0x40] sm:$0xff]  }
 0x2ba   : > { %v583_v35 = vpop.xlane.xlu1 %582 }
 0x2bb   : > { %v585_v36 = vmul.f32 0.015625, %v583_v35 }
 0x2bd   : > { %v586_v37 = vsub.f32 %v579_v31, %v585_v36  ;;  %v1718_v31 = vld [vmem:[%s2344_s7 + $0x8] sm:$0xff]  }
 0x2be   : > { %1574 = vmatpush3.bf16.msra.mxu0 %v1718_v31 }
 0x2bf   : > { %v587_v38 = vmul.f32 %v586_v37, %v586_v37  ;;  %1575 = vmatprep.subr.bf16.mxu0 %v1881_v8 }
 0x2c1   : > { %v588_v39 = vsel %vm580_vm3, %v587_v38, 0.0  ;;  %v701_v38 = vsub.s32 6, %v2037_v15 }
 0x2c2   : > { %589 = vadd.xlane.f32.xlu1 %v588_v39  ;;  %1576 = vmatpush3.bf16.msra.mxu0 %v1720_v33  ;;  %v706_v39 = vsub.s32 7, %v2037_v15 }
 0x2c3   : > { %1601 = vmatprep.subr.bf16.mxu0 %v1881_v8  ;;  %v702_v40 = vrot.slane %v2043_v17, %v701_v38 }
 0x2c4   : > { %v707_v43 = vrot.slane %v2043_v17, %v706_v39  ;;  %v1724_v17 = vld [vmem:[%s2345_s8 + $0x10] sm:$0xff]  }
 0x2d3   : > { %713 = vperm.xlu1 %1698, %v710_v57   ;;  %v1729_v57 = vld [vmem:[%s2346_s9] sm:$0xff]  }
 0x34b   : > { %v590_v44 = vpop.xlane.xlu1 %589 }
 0x34c   : > { %v591_v45 = vmul.f32 0.015625, %v590_v44 }
 0x34e   : > { %v592_v46 = vadd.f32 1e-05, %v591_v45 }
 0x34f   : > { %v714_v19 = vpop.permute.xlu1 %713 }
 0x350   : > { %1736 = vrsqrt.f32 %v592_v46  ;;  %v2124_v22 = vmul.f32 %v714_v19, %v709_v13 }
 0x352   : > { %v2142_v28 = vpack.c.bf16 %v2124_v22, %v2124_v22 }
 0x35d   : > { %v1737_v50 = vpop.eup %1736 }
 0x35e   : > { %v594_v51 = vmul.f32 %v1737_v50, %v586_v37  ;;  %v1722_v50 = vld [vmem:[%s2345_s8 + $0x18] sm:$0xff]  }
 0x360   : > { %v599_v53 = vmul.f32 %v598_v49, %v594_v51  ;;  %v1723_v51 = vld [vmem:[%s2346_s9 + $0x18] sm:$0xff]  }
 0x362   : > { %v604_v54 = vadd.f32 %v603_v52, %v599_v53  ;;  %v1725_v53 = vld [vmem:[%s2346_s9 + $0x10] sm:$0xff]  }
 0x364   : > { %v613_v55 = vpack.c.bf16 %v604_v54, %v604_v54  ;;  %v1726_v54 = vld [vmem:[%s2345_s8 + $0x8] sm:$0xff]  }
 0x366   : > { %1558 = vmatmul.mubr.msk.bf16.vlgmr.msra.gmra.mxu1 %vm580_vm3, %v613_v55  ;;  %v1727_v55 = vld [vmem:[%s2346_s9 + $0x8] sm:$0xff]  }
 0x367   : > { %1597 = vmatprep.mubr.msk.bf16.mxu1 %vm1882_vm2, %v1881_v8  ;;  %1582 = vmatpush3.bf16.msra.mxu1 %v1707_v4 }
 0x368   : > { %1583 = vmatprep.subr.bf16.mxu1 %v1881_v8 }
 0x36b   : > { %1584 = vmatpush3.bf16.msra.mxu1 %v1709_v6 }
 0x36c   : > { %1585 = vmatprep.subr.bf16.mxu1 %v1881_v8 }
 0x36f   : > { %1586 = vmatpush3.bf16.msra.mxu1 %v1711_v21 }
 0x370   : > { %1587 = vmatprep.subr.bf16.mxu1 %v1881_v8 }
 0x373   : > { %1588 = vmatpush3.bf16.msra.mxu1 %v1713_v24 }
 0x374   : > { %1589 = vmatprep.subr.bf16.mxu1 %v1881_v8 }
 0x377   : > { %1590 = vmatpush3.bf16.msra.mxu1 %v1715_v27 }
 0x378   : > { %1591 = vmatprep.subr.bf16.mxu1 %v1881_v8 }
 0x37b   : > { %1592 = vmatpush3.bf16.msra.mxu1 %v1717_v30 }
 0x37c   : > { %1593 = vmatprep.subr.bf16.mxu1 %v1881_v8 }
 0x37f   : > { %1594 = vmatpush3.bf16.msra.mxu1 %v1719_v32 }
 0x380   : > { %1595 = vmatprep.subr.bf16.mxu1 %v1881_v8 }
 0x383   : > { %1596 = vmatpush3.bf16.msra.mxu1 %v1721_v34 }
 0x384   : > { %1613 = vmatprep.subr.bf16.mxu1 %v1881_v8 }
 0x426   : > { %v679_v60 = vpop.f32.mrf.mxu1 }
 0x427   : > { %v680_v61 = vadd.f32 %v679_v60, %v617_v59  ;;  %v2223_v59 = vld [vmem:[%s2341_s4 + $0x8] sm:$0xff] }
 0x428   : > { %v1559_v62 = vpop.f32.mrf.mxu1  ;;  %v745_v60 = vrot.slane %v2223_v59, %v507_v16  ;;  %v860_v3 = vrot.slane %v2223_v59, %v512_v18  ;;  %v1044_v27 = vrot.slane %v2223_v59, %v597_v47  ;;  %v974_v29 = vrot.slane %v2223_v59, %v521_v26 }
 0x429   : > { %v685_v63 = vmax.f32 %v680_v61, 0.0 }
 0x42a   : > { %v682_v0 = vpop.f32.mrf.mxu1 }
 0x42b   : > { %v686_v1 = vsel %vm580_vm3, %v685_v63, 0.0 }
 0x42c   : > { %687 = vadd.xlane.f32.xlu0 %v686_v1  ;;  %v1560_v2 = vpop.f32.mrf.mxu1 }
 0x4b5   : > { %v688_v7 = vpop.xlane.xlu0 %687 }
 0x4b6   : > { %v689_v9 = vmul.f32 0.015625, %v688_v7 }
 0x4b8   : > { %v690_v10 = vsub.f32 %v685_v63, %v689_v9 }
 0x4ba   : > { %v691_v11 = vmul.f32 %v690_v10, %v690_v10 }
 0x4bc   : > { %v692_v12 = vsel %vm580_vm3, %v691_v11, 0.0 }
 0x4bd   : > { %693 = vadd.xlane.f32.xlu0 %v692_v12 }
 0x4d3   : > { %720 = vrot.lane.b32.xlu0 %v2142_v28, %s1884_s26  ;;  %s2238_s26 = sand.u32 1, %s1868_s22  }
 0x4d4   : > { %s2350_s28 = sshll.u32 %s2238_s26, 3  ;;  %s1260_s20 = scalar_lea.sflag [#allocation7], %s2238_s26 }
 0x4d5   : > { %s2245_s29 = scalar_lea.vmem [#allocation6], %s2350_s28  ;;  %s1885_s28 = smov [#allocation6]  }
 0x4d6   : > { %s1286_s19 = sshll.u32 %s2245_s29, 4  ;;  %s1287_s19 = int_to_ptr.vmem [resolvable:$true] %s1286_s19 }
 0x4d7   : > { %s1782_s0 = scalar_lea.vmem %s1287_s19, 128 }
 0x4d8   : > { %p1783_p6 = scmp.ne.s32.totalorder %s1287_s19, %s1782_s0 }
 0x4da   : > { %p1784_p9 = pnand %p1783_p6, %p1990_p5 }
 0x4dc   : > { %p1785_p10 = pneg %p1784_p9 }
 0x546   : > { %v694_v35 = vpop.xlane.xlu0 %693 }
 0x547   : > { %v695_v36 = vmul.f32 0.015625, %v694_v35 }
 0x549   : > { %v696_v37 = vadd.f32 1e-05, %v695_v36 }
 0x54a   : > { %v721_v46 = vpop.permute.xlu0 %720 }
 0x54b   : > { %1738 = vrsqrt.f32 %v696_v37 }
 0x558   : > { %v1739_v41 = vpop.eup %1738 }
 0x559   : > { %v698_v42 = vmul.f32 %v1739_v41, %v690_v10 }
 0x55b   : > { %v703_v44 = vmul.f32 %v702_v40, %v698_v42 }
 0x55d   : > { %v708_v45 = vadd.f32 %v707_v43, %v703_v44 }
 0x55f   : > { %v717_v49 = vpack.c.bf16 %v708_v45, %v708_v45 }
 0x561   : > { %v724_v52 = vsel %vm580_vm3, %v717_v49, %v721_v46  ;;  %v1731_v46 = vld [vmem:[%s2347_s10 + $0x10] sm:$0xff]  }
 0x562   : > { %1578 = vmatmul.mubr.bf16.vlgmr.msra.gmra.mxu0 %v724_v52  ;;  %1598 = vmatmul.mubr.bf16.vlgmr.msra.gmra.mxu1 %v724_v52 }
 0x563   : > { %1602 = vmatpush3.bf16.msra.mxu0 %v1722_v50  ;;  %1614 = vmatpush3.bf16.msra.mxu1 %v1723_v51  ;;  %v1733_v50 = vld [vmem:[%s2347_s10] sm:$0xff]  }
 0x564   : > { %1603 = vmatprep.subr.bf16.mxu0 %v1881_v8  ;;  %1615 = vmatprep.subr.bf16.mxu1 %v1881_v8 }
 0x565   : > { %1609 = vmatprep.mubr.msk.bf16.mxu0 %vm1882_vm2, %v1881_v8  ;;  %1621 = vmatprep.mubr.msk.bf16.mxu1 %vm1882_vm2, %v1881_v8 }
 0x567   : > { %1604 = vmatpush3.bf16.msra.mxu0 %v1724_v17  ;;  %1616 = vmatpush3.bf16.msra.mxu1 %v1725_v53  ;;  %v1136_v53 = vrot.slane %v2223_v59, %v602_v48  ;;  %v1223_v48 = vld [vmem:[%s485_s18] sm:$0xff]  ;;  %s1786_s18 = sshll.u32 %s1885_s28, 4  ;;  %s1787_s18 = int_to_ptr.vmem [resolvable:$false] %s1786_s18 }
 0x568   : > { %1605 = vmatprep.subr.bf16.mxu0 %v1881_v8  ;;  %1617 = vmatprep.subr.bf16.mxu1 %v1881_v8  ;;  %vm1224_vm4 = vcmp.gt.f32.partialorder %v1223_v48, 0.0  ;;  %s1788_s1 = scalar_lea.vmem %s1787_s18, 256  ;;  %p1789_p11 = scmp.lt.s32.totalorder %s1287_s19, %s1787_s18 }
 0x569   : > { %p1790_p12 = scmp.lt.s32.totalorder %s1788_s1, %s1782_s0 }
 0x56b   : > { %1606 = vmatpush3.bf16.msra.mxu0 %v1726_v54  ;;  %1618 = vmatpush3.bf16.msra.mxu1 %v1727_v55  ;;  %v1141_v55 = vrot.slane %v2223_v59, %v616_v58  ;;  %p1791_p13 = por %p1790_p12, %p1789_p11 }
 0x56c   : > { %1607 = vmatprep.subr.bf16.mxu0 %v1881_v8  ;;  %1619 = vmatprep.subr.bf16.mxu1 %v1881_v8 }
 0x56d   : > { %p1792_p0 = pnand %p1791_p13, %p1785_p10 }
 0x56f   : > { %1608 = vmatpush3.bf16.msra.mxu0 %v1728_v56  ;;  %1620 = vmatpush3.bf16.msra.mxu1 %v1729_v57 }
 0x570   : > { %1625 = vmatprep.subr.bf16.mxu0 %v1881_v8 }
 0x572   : > { %1610 = vmatmul.mubr.msk.bf16.vlgmr.msra.gmra.mxu0 %vm580_vm3, %v717_v49  ;;  %1622 = vmatmul.mubr.msk.bf16.vlgmr.msra.gmra.mxu1 %vm580_vm3, %v2142_v28  ;;  %v1732_v49 = vld [vmem:[%s2347_s10 + $0x8] sm:$0xff]  }
 0x573   : > { %1633 = vmatprep.mubr.msk.bf16.mxu0 %vm1882_vm2, %v1881_v8 }
 0x622   : > { %v828_v61 = vpop.f32.mrf.mxu0  ;;  %v943_v62 = vpop.f32.mrf.mxu1 }
 0x623   : > { %v829_v63 = vadd.f32 %v828_v61, %v745_v60  ;;  %v944_v9 = vadd.f32 %v943_v62, %v860_v3  ;;  %v1229_v3 = vand.u32 127, %v505_v14 }
 0x624   : > { %v1579_v0 = vpop.f32.mrf.mxu0  ;;  %v1599_v1 = vpop.f32.mrf.mxu1 }
 0x625   : > { %v1453_v2 = vmul.f32 -1.442695, %v829_v63  ;;  %v1478_v10 = vmul.f32 -1.442695, %v944_v9 }
 0x626   : > { %v831_v4 = vpop.f32.mrf.mxu0  ;;  %v946_v5 = vpop.f32.mrf.mxu1 }
 0x627   : > { %1740 = vpow2.f32 %v1453_v2  ;;  %v1230_v4 = vcvt.s32.f32 %v1229_v3 }
 0x628   : > { %v1580_v6 = vpop.f32.mrf.mxu0  ;;  %v1600_v7 = vpop.f32.mrf.mxu1  ;;  %1742 = vpow2.f32 %v1478_v10 }
 0x632   : > { %v1035_v11 = vpop.f32.mrf.mxu0  ;;  %v1106_v16 = vpop.f32.mrf.mxu1 }
 0x633   : > { %v1107_v30 = vadd.f32 %v1106_v16, %v1044_v27  ;;  %v1036_v32 = vadd.f32 %v1035_v11, %v974_v29 }
 0x634   : > { %v1741_v12 = vpop.eup %1740  ;;  %v1611_v13 = vpop.f32.mrf.mxu0 }
 0x635   : > { %v1623_v19 = vpop.f32.mrf.mxu1  ;;  %v837_v20 = vadd.f32 1.0, %v1741_v12  ;;  %v1743_v25 = vpop.eup %1742 }
 0x636   : > { %v1038_v21 = vpop.f32.mrf.mxu0  ;;  %v952_v28 = vadd.f32 1.0, %v1743_v25 }
 0x637   : > { %v1109_v23 = vpop.f32.mrf.mxu1  ;;  %1744 = vrcp.f32 %v837_v20 }
 0x638   : > { %v1612_v24 = vpop.f32.mrf.mxu0  ;;  %1746 = vrcp.f32 %v952_v28 }
 0x639   : > { %v1624_v18 = vpop.f32.mrf.mxu1 }
 0x644   : > { %v1745_v31 = vpop.eup %1744 }
 0x645   : > { %v1112_v33 = vmul.f32 %v1745_v31, %v1107_v30  ;;  %v1747_v35 = vpop.eup %1746 }
 0x646   : > { %v1115_v36 = vsub.f32 1.0, %v1747_v35  ;;  %v1117_v39 = vmul.f32 %v1747_v35, %v2124_v22  ;;  %v1730_v22 = vld [vmem:[%s2347_s10 + $0x18] sm:$0xff]  }
 0x647   : > { %v1113_v34 = vadd.f32 %v1112_v33, %v1036_v32  ;;  %1626 = vmatpush3.bf16.msra.mxu0 %v1730_v22 }
 0x648   : > { %1627 = vmatprep.subr.bf16.mxu0 %v1881_v8 }
 0x649   : > { %1748 = vtanh.f32 %v1113_v34 }
 0x64b   : > { %1628 = vmatpush3.bf16.msra.mxu0 %v1731_v46 }
 0x64c   : > { %1629 = vmatprep.subr.bf16.mxu0 %v1881_v8 }
 0x64f   : > { %1630 = vmatpush3.bf16.msra.mxu0 %v1732_v49 }
 0x650   : > { %1631 = vmatprep.subr.bf16.mxu0 %v1881_v8  ;;  %v1155_v8 = vrot.slane %v2223_v59, %v701_v38 }
 0x653   : > { %1632 = vmatpush3.bf16.msra.mxu0 %v1733_v50 }
 0x656   : > { %v1749_v47 = vpop.eup %1748 }
 0x657   : > { %v1116_v37 = vmul.f32 %v1749_v47, %v1115_v36 }
 0x659   : > { %v1118_v40 = vadd.f32 %v1117_v39, %v1116_v37 }
 0x65b   : > { %v1120_v26 = vsel %vm580_vm3, %v1118_v40, 0.0  ;;  %1119 = vst.msk [vmem:[%s2245_s29] sm:$0xff] %vm580_vm3, %v1118_v40 }
 0x65c   : > { %1121 = vadd.xlane.f32.xlu1 %v1120_v26 }
 0x6e5   : > { %v1122_v41 = vpop.xlane.xlu1 %1121 }
 0x6e6   : > { %v1123_v42 = vmul.f32 0.015625, %v1122_v41 }
 0x6e8   : > { %v1124_v43 = vsub.f32 %v1118_v40, %v1123_v42 }
 0x6ea   : > { %v1125_v44 = vmul.f32 %v1124_v43, %v1124_v43 }
 0x6ec   : > { %v1126_v45 = vsel %vm580_vm3, %v1125_v44, 0.0 }
 0x6ed   : > { %1127 = vadd.xlane.f32.xlu0 %v1126_v45 }
 0x776   : > { %v1128_v51 = vpop.xlane.xlu0 %1127 }
 0x777   : > { %v1129_v52 = vmul.f32 0.015625, %v1128_v51 }
 0x779   : > { %v1130_v17 = vadd.f32 1e-05, %v1129_v52 }
 0x77b   : > { %1750 = vrsqrt.f32 %v1130_v17 }
 0x788   : > { %v1751_v54 = vpop.eup %1750 }
 0x789   : > { %v1132_v56 = vmul.f32 %v1751_v54, %v1124_v43 }
 0x78b   : > { %v1137_v57 = vmul.f32 %v1136_v53, %v1132_v56 }
 0x78d   : > { %v1142_v60 = vadd.f32 %v1141_v55, %v1137_v57 }
 0x78f   : > { %v1151_v61 = vpack.c.bf16 %v1142_v60, %v1142_v60 }
 0x791   : > { %1634 = vmatmul.mubr.msk.bf16.vlgmr.msra.gmra.mxu0 %vm580_vm3, %v1151_v61 }
 0x851   : > { %v1217_v62 = vpop.f32.mrf.mxu0 }
 0x852   : > { %v1218_v63 = vadd.f32 %v1217_v62, %v1155_v8 }
 0x853   : > { %v1635_v0 = vpop.f32.mrf.mxu0 }
 0x854   : > { %v1225_v58 = vsel %vm1224_vm4, %v1218_v63, -1e+10 }
 0x855   : > { %1226 = vmax.xlane.f32.xlu1 %v1225_v58  ;;  %v1220_v1 = vpop.f32.mrf.mxu0 }
 0x857   : > { %v1636_v2 = vpop.f32.mrf.mxu0 }
 0x8de   : > { %v1227_v5 = vpop.xlane.xlu1 %1226 }
 0x8df   : > { %v1235_v6 = vsub.f32 %v1225_v58, %v1227_v5  ;;  %vm1231_vm5 = vcmp.eq.f32.partialorder %v1225_v58, %v1227_v5 }
 0x8e0   : > { %v1232_v7 = vsel %vm1231_vm5, %v1230_v4, 128.0 }
 0x8e1   : > { %v1236_v15 = vmul.f32 1.442695, %v1235_v6  ;;  %1233 = vmin.xlane.f32.xlu0 %v1232_v7 }
 0x8e3   : > { %1752 = vpow2.f32 %v1236_v15 }
 0x8f0   : > { %v1753_v38 = vpop.eup %1752 }
 0x8f1   : > { %1238 = vadd.xlane.f32.xlu1 %v1753_v38 }
 0x96a   : > { %v1234_v14 = vpop.xlane.xlu0 %1233 }
 0x96b   : > { %vm1243_vm6 = vcmp.eq.f32.partialorder %v1230_v4, %v1234_v14 }
 0x97a   : > { %v1239_v59 = vpop.xlane.xlu1 %1238 }
 0x97b   : > { %1754 = vlog2.f32 %v1239_v59 }
 0x988   : > { %v1755_v9 = vpop.eup %1754 }
 0x989   : > { %v1241_v10 = vmul.f32 0.6931472, %v1755_v9 }
 0x98b   : > { %v1242_v11 = vadd.f32 %v1241_v10, %v1227_v5 }
 0x98d   : > { %v1244_v16 = vsub.f32 %v1225_v58, %v1242_v11 }
 0x98f   : > { %v1245_v12 = vsel %vm1243_vm6, %v1244_v16, 0.0 }
 0x990   : > { %1246 = vadd.xlane.f32.xlu1 %v1245_v12 }
 0x991   : > { %1795 = shalt.err (!%p1792_p0)
}
 0x992   : > { %s1796_s2 = scalar_lea.hbm %s1284_s15, 128  ;;  %s1800_s30 = scalar_lea.hbm %s2349_s12, 384 }
 0x993   : > { %p1797_p1 = scmp.ne.s32.totalorder %s1284_s15, %s1796_s2  ;;  %p1801_p4 = scmp.lt.s32.totalorder %s1284_s15, %s2349_s12 }
 0x994   : > { %p1802_p7 = scmp.lt.s32.totalorder %s1800_s30, %s1796_s2 }
 0x995   : > { %p1798_p2 = pnand %p1797_p1, %p1990_p5 }
 0x996   : > { %p1803_p8 = por %p1802_p7, %p1801_p4 }
 0x997   : > { %p1799_p3 = pneg %p1798_p2 }
 0x999   : > { %p1804_p6 = pnand %p1803_p8, %p1799_p3 }
 0x99b   : > { %1807 = shalt.err (!%p1804_p6)
}
 0x99c   : > { %1642 = dma.vmem_to_hbm [thread:$0]  (%p1990_p5), %s1287_s19, 128, %s1284_s15, %s1260_s20   ;;  %vm1248_vm7 = vcmp.eq.f32.partialorder %v1230_v4, 0.0  ;;  %vm1250_vm8 = vcmp.eq.f32.partialorder %v1230_v4, 1.0 }
 0x99d   : > { %s2364_s1 = sshll.u32 %s2238_s26, 3  ;;  %v1249_v19 = vsel %vm1248_vm7, %v1234_v14, 0.0  ;;  %s2365_s2 = sshll.u32 %s1973_s25, 7 }
 0x99e   : > { %s462_s0 = scalar_lea.vmem [#allocation5], %s2364_s1  ;;  %s1271_s18 = scalar_lea.hbm %s2348_s11, %s2365_s2 }
 0x99f   : > { %s1273_s28 = sshll.u32 %s462_s0, 4  ;;  %s1255_s29 = scalar_lea.sflag [#allocation4], %s2238_s26  ;;  %s1274_s28 = int_to_ptr.vmem [resolvable:$true] %s1273_s28 }
 0x9a0   : > { %s1808_s17 = scalar_lea.vmem %s1274_s28, 128  ;;  %s1886_s15 = smov [#allocation5]  }
 0x9a1   : > { %p1809_p9 = scmp.ne.s32.totalorder %s1274_s28, %s1808_s17  ;;  %s1812_s19 = sshll.u32 %s1886_s15, 4  ;;  %s1813_s19 = int_to_ptr.vmem [resolvable:$false] %s1812_s19 }
 0x9a2   : > { %s1814_s20 = scalar_lea.vmem %s1813_s19, 256  ;;  %p1815_p12 = scmp.lt.s32.totalorder %s1274_s28, %s1813_s19 }
 0x9a3   : > { %p1810_p10 = pnand %p1809_p9, %p1990_p5  ;;  %p1816_p13 = scmp.lt.s32.totalorder %s1814_s20, %s1808_s17 }
 0x9a5   : > { %p1811_p11 = pneg %p1810_p10  ;;  %p1817_p0 = por %p1816_p13, %p1815_p12 }
 0x9a7   : > { %p1818_p1 = pnand %p1817_p0, %p1811_p11 }
 0xa19   : > { %v1247_v13 = vpop.xlane.xlu1 %1246 }
 0xa1a   : > { %v1251_v20 = vsel %vm1250_vm8, %v1247_v13, 0.0 }
 0xa1b   : > { %v1252_v21 = vadd.f32 %v1251_v20, %v1249_v19 }
 0xa1d   : > { %1253 = vst [vmem:[%s462_s0] sm:$0xff] %v1252_v21 }
 0xa1e   : > { %1821 = shalt.err (!%p1818_p1)
}
 0xa1f   : > { %s1822_s25 = scalar_lea.hbm %s1271_s18, 128  ;;  %s1826_s1 = scalar_lea.hbm %s2348_s11, 384 }
 0xa20   : > { %p1823_p2 = scmp.ne.s32.totalorder %s1271_s18, %s1822_s25  ;;  %p1827_p7 = scmp.lt.s32.totalorder %s1271_s18, %s2348_s11 }
 0xa21   : > { %p1828_p8 = scmp.lt.s32.totalorder %s1826_s1, %s1822_s25 }
 0xa22   : > { %p1824_p3 = pnand %p1823_p2, %p1990_p5 }
 0xa23   : > { %p1829_p6 = por %p1828_p8, %p1827_p7 }
 0xa24   : > { %p1825_p4 = pneg %p1824_p3 }
 0xa26   : > { %p1830_p9 = pnand %p1829_p6, %p1825_p4 }
 0xa28   : > { %1833 = shalt.err (!%p1830_p9)
}
 0xa29   : > { %1641 = dma.vmem_to_hbm [thread:$0]  (%p1990_p5), %s1274_s28, 128, %s1271_s18, %s1255_s29  }
 0xa2a PF: > { %p1658_p10 = scmp.ge.s32.totalorder %s1876_s24, 2  ;;  %s1298_s3 = sand.u32 1, %s1864_s21  }
 0xa2b   : > { %p2366_p11 = scmp.ne.s32.totalorder %s2358_s14, 0  ;;  %s1299_s16 = scalar_lea.sflag [#allocation4], %s1298_s3 }
 0xa2d   : > { %p1650_p12 = pnand %p1658_p10, %p2366_p11 }
 0xa2f   : > { %p1651_p13 = pneg %p1650_p12 }
 0xa31   : > { %1855 = dma.done.wait (%p1651_p13), %s1299_s16, 128  }
 0xa32   : > { %1857 = vsyncadd (%p1651_p13), %s1299_s16, 4294967168  ;;  %s1308_s17 = scalar_lea.sflag [#allocation7], %s1298_s3 }
 0xa33   : > { %1859 = dma.done.wait (%p1651_p13), %s1308_s17, 128  }
 0xa34   : > { %1861 = vsyncadd (%p1651_p13), %s1308_s17, 4294967168  ;;  %s2367_s13 = sld [smem:[#allocation11_spill]]  ;;  %p27_p5 = scmp.ge.s32.totalorder %s1977_s27, 5  }
 0xa35   : > { %s2368_s21 = smov %s1868_s22  ;;  %s2369_s22 = smov %s1872_s23 }
 0xa36   : > { %s2371_s24 = smov %s1977_s27  ;;  %29 = sbr.rel (!%p27_p5) target bundleno = 11 (0xb), region = 131 }
 0xa3a   : > { %s2370_s23 = smov %s2367_s13 }
 0xa3b   :  { %1313 = vsyncpa [#allocation3], 1 }
 0xa3c   :  { %1315 = vsyncpa [#allocation3 + $0x1], 1 }
 0xa3d   :  { %1316 = vsyncpa [#allocation4], 1 }
 0xa3e   :  { %1318 = vsyncpa [#allocation4 + $0x1], 1 }
 0xa3f   :  { %1319 = vsyncpa [#allocation7], 1 }
 0xa40   :  { %1321 = vsyncpa [#allocation7 + $0x1], 1 }

</bundles_post_ra>
